<compile_context>
chip_gen: v6e
topology: v6e:2x2x1
jax: 0.10.0
libtpu: 0.0.40
codegen_flags: <defaults>
</compile_context>

<pallas_src>
import functools

import jax
import jax.numpy as jnp
from jax import lax
from jax.experimental import pallas as pl
from jax.experimental.pallas import tpu as pltpu


def _self_attn_kernel(x_ref, q_ref, k_ref, v_ref, gamma_ref, nvalid_ref, o_ref,
                      m_sc, l_sc, acc_sc, *, needs_mask, block_k):
    """Grid = (B, N//TQ, N//TK). Last axis is the online-softmax key reduction.

    Refs:
      x_ref : (1, C,  TQ) f32   residual slab (query-tile indexed)
      q_ref : (1, C8, TQ) bf16  pre-projected queries
      k_ref : (1, C8, TK) bf16  pre-projected keys
      v_ref : (1, C,  TK) bf16  pre-projected values
      gamma_ref, nvalid_ref : (1,) SMEM scalars
      o_ref : (1, C,  TQ) f32
      m_sc, l_sc : (1, TQ) f32 running max / running sum
      acc_sc     : (C, TQ) f32 output accumulator (already in output layout)
    """
    ki = pl.program_id(2)
    nk = pl.num_programs(2)

    @pl.when(ki == 0)
    def _():
        m_sc[...] = jnp.full_like(m_sc, -jnp.inf)
        l_sc[...] = jnp.zeros_like(l_sc)
        acc_sc[...] = jnp.zeros_like(acc_sc)

    q = q_ref[0]                                  # (C8, TQ) bf16
    k = k_ref[0]                                  # (C8, TK) bf16
    v = v_ref[0]                                  # (C,  TK) bf16

    # Energy, produced already transposed: sT[key, query] = sum_c k[c,key]*q[c,query].
    # bf16 operands, f32 accumulation on the MXU; no explicit transposes anywhere.
    s_t = lax.dot_general(k, q, (((0,), (0,)), ((), ())),
                          preferred_element_type=jnp.float32)   # (TK, TQ)

    if needs_mask:
        key_pos = ki * block_k + lax.broadcasted_iota(jnp.int32, s_t.shape, 0)
        s_t = jnp.where(key_pos < nvalid_ref[0], s_t, -jnp.inf)

    # Online softmax over the key (sublane) axis; stats are lane-dense (1, TQ).
    m_prev = m_sc[...]                                           # (1, TQ)
    m_new = jnp.maximum(m_prev, jnp.max(s_t, axis=0, keepdims=True))
    alpha = jnp.exp(m_prev - m_new)                              # (1, TQ)
    # NOTE: exp kept in f32 for v5e compatibility / accuracy; p is cast to bf16 only
    # for the PV matmul operands (f32 accumulation).
    p_t = jnp.exp(s_t - m_new)                                   # (TK, TQ) f32
    l_sc[...] = alpha * l_sc[...] + jnp.sum(p_t, axis=0, keepdims=True)
    # acc (C, TQ) += V (C, TK) @ P^T (TK, TQ)  -- lane-dense accumulator update.
    pv = jnp.dot(v, p_t.astype(jnp.bfloat16), preferred_element_type=jnp.float32)
    acc_sc[...] = alpha * acc_sc[...] + pv
    m_sc[...] = m_new

    @pl.when(ki == nk - 1)
    def _():
        inv_l = pl.reciprocal(l_sc[...], approx=False)           # (1, TQ), once per q-tile
        o_ref[0] = gamma_ref[0] * (acc_sc[...] * inv_l) + x_ref[0]


def _largest_tile(n, cap):
    """Largest multiple of 128 that divides n and is <= cap (n is a multiple of 128)."""
    best = 128
    t = 128
    top = min(n, cap)
    while t <= top:
        if n % t == 0:
            best = t
        t += 128
    return best


@functools.partial(jax.jit, static_argnames=("tq_max", "tk_max"))
def self_attn_pallas(x_nchw, wq, bq, wk, bk, wv, bv, gamma, *, tq_max=1024, tk_max=None):
    """x_nchw: (B, C, W, H) float32. Returns (B, C, W, H) float32."""
    B, C, W, H = x_nchw.shape
    C8 = wq.shape[0]
    N = W * H
    Npad = ((N + 127) // 128) * 128
    needs_mask = Npad != N

    x_flat = x_nchw.reshape(B, C, N).astype(jnp.float32)
    if needs_mask:
        x_flat = jnp.pad(x_flat, ((0, 0), (0, 0), (0, Npad - N)))

    # 1x1-conv projections ONCE in the wrapper (f32 accumulate), cast to bf16 for
    # MXU-native operands and halved key-side streaming bytes.
    q = (jnp.einsum('oc,bcn->bon', wq, x_flat) + bq[None, :, None]).astype(jnp.bfloat16)
    k = (jnp.einsum('oc,bcn->bon', wk, x_flat) + bk[None, :, None]).astype(jnp.bfloat16)
    v = (jnp.einsum('oc,bcn->bon', wv, x_flat) + bv[None, :, None]).astype(jnp.bfloat16)

    # Tile selection: large tq (cuts key-slab re-read traffic); collapse the key
    # reduction entirely when the whole bf16 K+V row comfortably fits in VMEM.
    tq = _largest_tile(Npad, tq_max)
    if tk_max is None:
        kv_row_bytes = (C8 + C) * Npad * 2
        tk_cap = Npad if kv_row_bytes <= 4 * 1024 * 1024 else 512
    else:
        tk_cap = tk_max
    tk = _largest_tile(Npad, tk_cap)

    grid = (B, Npad // tq, Npad // tk)

    gamma1 = jnp.reshape(gamma, (1,)).astype(jnp.float32)
    n_valid = jnp.full((1,), N, dtype=jnp.int32)

    kernel = functools.partial(_self_attn_kernel, needs_mask=needs_mask, block_k=tk)

    # Advisory cost: kernel-only flops (projections live outside), K/V re-read included.
    flops = 2 * B * Npad * Npad * (C8 + C)
    bytes_accessed = B * (C * Npad * 4                       # residual read
                          + C8 * Npad * 2                    # Q read
                          + (Npad // tq) * (C8 + C) * Npad * 2   # K+V re-read
                          + C * Npad * 4)                    # output write
    cost = pl.CostEstimate(flops=flops, transcendentals=B * Npad * Npad,
                           bytes_accessed=bytes_accessed)

    # Rough per-step VMEM budget (double-buffered inputs + scratch + temporaries).
    vmem_bytes = (2 * C * tq * 4            # x residual tile (double buffered)
                  + 2 * C8 * tq * 2         # Q tile
                  + 2 * (C8 + C) * tk * 2   # K + V tiles
                  + 2 * C * tq * 4          # output tile
                  + C * tq * 4 + 2 * tq * 4 # acc + m/l scratch
                  + 4 * tk * tq * 4)        # sT / pT temporaries headroom
    vmem_limit = int(min(max(2 * vmem_bytes, 32 * 1024 * 1024), 48 * 1024 * 1024))

    out_flat = pl.pallas_call(
        kernel,
        out_shape=jax.ShapeDtypeStruct((B, C, Npad), jnp.float32),
        grid_spec=pltpu.PrefetchScalarGridSpec(
            num_scalar_prefetch=0,
            grid=grid,
            in_specs=[
                pl.BlockSpec((1, C, tq), lambda b, qi, ki: (b, 0, qi)),    # x residual
                pl.BlockSpec((1, C8, tq), lambda b, qi, ki: (b, 0, qi)),   # Q (bf16)
                pl.BlockSpec((1, C8, tk), lambda b, qi, ki: (b, 0, ki)),   # K (bf16)
                pl.BlockSpec((1, C, tk), lambda b, qi, ki: (b, 0, ki)),    # V (bf16)
                pl.BlockSpec(memory_space=pltpu.MemorySpace.SMEM),         # gamma
                pl.BlockSpec(memory_space=pltpu.MemorySpace.SMEM),         # n_valid
            ],
            out_specs=pl.BlockSpec((1, C, tq), lambda b, qi, ki: (b, 0, qi)),
            scratch_shapes=[
                pltpu.VMEM((1, tq), jnp.float32),   # running max  (lane-dense)
                pltpu.VMEM((1, tq), jnp.float32),   # running sum  (lane-dense)
                pltpu.VMEM((C, tq), jnp.float32),   # accumulator, output layout
            ],
        ),
        compiler_params=pltpu.CompilerParams(
            dimension_semantics=("parallel", "parallel", "arbitrary"),
            vmem_limit_bytes=vmem_limit),
        cost_estimate=cost,
    )(x_flat, q, k, v, gamma1, n_valid)

    out_flat = out_flat[:, :, :N]
    return out_flat.reshape(B, C, W, H)


def self_attn_reference(x_nchw, wq, bq, wk, bk, wv, bv, gamma):
    """Pure-JAX f32 reference mirroring the PyTorch forward."""
    B, C, W, H = x_nchw.shape
    N = W * H
    x = x_nchw.reshape(B, C, N)
    q = jnp.einsum('oc,bcn->bon', wq, x) + bq[None, :, None]   # (B, C8, N)
    k = jnp.einsum('oc,bcn->bon', wk, x) + bk[None, :, None]   # (B, C8, N)
    v = jnp.einsum('oc,bcn->bon', wv, x) + bv[None, :, None]   # (B, C,  N)
    energy = jnp.einsum('bci,bcj->bij', q, k)                  # (B, N, N)
    attn = jax.nn.softmax(energy, axis=-1)
    out = jnp.einsum('bcj,bij->bci', v, attn)                  # (B, C, N)
    out = gamma * out + x
    return out.reshape(B, C, W, H)


def _check(x, wq, bq, wk, bk, wv, bv, gamma, **kwargs):
    out = jax.block_until_ready(self_attn_pallas(x, wq, bq, wk, bk, wv, bv, gamma, **kwargs))
    ref = self_attn_reference(x, wq, bq, wk, bk, wv, bv, gamma)
    assert out.shape == x.shape
    max_err = float(jnp.max(jnp.abs(out - ref)))
    assert jnp.allclose(out, ref, atol=2e-2, rtol=2e-2), \
        f"mismatch vs reference (max abs err {max_err}, shape {x.shape}, kwargs {kwargs})"


if __name__ == "__main__":
    B, C = 2, 16
    C8 = C // 8

    key = jax.random.PRNGKey(0)
    kx, kq, kbq, kk, kbk, kv, kbv, kx2 = jax.random.split(key, 8)

    # Conv2d(k=1) weights are (Cout, Cin, 1, 1); stored here as (Cout, Cin).
    wq = jax.random.normal(kq, (C8, C), dtype=jnp.float32) * 0.1
    bq = jax.random.normal(kbq, (C8,), dtype=jnp.float32) * 0.1
    wk = jax.random.normal(kk, (C8, C), dtype=jnp.float32) * 0.1
    bk = jax.random.normal(kbk, (C8,), dtype=jnp.float32) * 0.1
    wv = jax.random.normal(kv, (C, C), dtype=jnp.float32) * 0.1
    bv = jax.random.normal(kbv, (C,), dtype=jnp.float32) * 0.1
    # PyTorch inits gamma to 0 (output == input); use 0.5 to exercise the full path.
    gamma = jnp.array(0.5, dtype=jnp.float32)

    # 1) Main case: N = 16*16 = 256 (multiple of 128), key reduction collapsed (tk = N).
    x = jax.random.normal(kx, (B, C, 16, 16), dtype=jnp.float32)
    _check(x, wq, bq, wk, bk, wv, bv, gamma)

    # 2) Same inputs, key axis forced to tile (tk = 128) -> exercises the online-softmax
    #    reduction path (grid axis 2 of size 2) with accumulator residency.
    _check(x, wq, bq, wk, bk, wv, bv, gamma, tk_max=128)

    # 3) Non-multiple-of-128 spatial size: N = 10*10 = 100 padded to 128, padded keys
    #    masked with -inf inside the kernel, padded queries sliced off in the wrapper.
    x_small = jax.random.normal(kx2, (B, C, 10, 10), dtype=jnp.float32)
    _check(x_small, wq, bq, wk, bk, wv, bv, gamma)

    print("KERNEL_OK")
</pallas_src>

<mosaic_0001>
module attributes {stable_mosaic.version = 11 : i64} {
  func.func @_self_attn_kernel(%arg0: i32, %arg1: i32, %arg2: i32, %arg3: memref<1x16x256xf32, #tpu.memory_space<vmem>>, %arg4: memref<1x2x256xbf16, #tpu.memory_space<vmem>>, %arg5: memref<1x2x256xbf16, #tpu.memory_space<vmem>>, %arg6: memref<1x16x256xbf16, #tpu.memory_space<vmem>>, %arg7: memref<1xf32, #tpu.memory_space<smem>>, %arg8: memref<1xi32, #tpu.memory_space<smem>>, %arg9: memref<1x16x256xf32, #tpu.memory_space<vmem>>, %arg10: memref<1x256xf32, #tpu.memory_space<vmem>>, %arg11: memref<1x256xf32, #tpu.memory_space<vmem>>, %arg12: memref<16x256xf32, #tpu.memory_space<vmem>>) attributes {dimension_semantics = [#tpu.dimension_semantics<parallel>, #tpu.dimension_semantics<parallel>, #tpu.dimension_semantics<arbitrary>], iteration_bounds = array<i64: 2, 1, 1>, scalar_prefetch = 0 : i64, scratch_operands = 3 : i64, tpu.core_type = #tpu.core_type<tc>, window_params = [{transform_indices = @transform_0, window_bounds = array<i64: 1, 16, 256>}, {transform_indices = @transform_1, window_bounds = array<i64: 1, 2, 256>}, {transform_indices = @transform_2, window_bounds = array<i64: 1, 2, 256>}, {transform_indices = @transform_3, window_bounds = array<i64: 1, 16, 256>}, {transform_indices = @transform_4, window_bounds = array<i64: 1>}, {transform_indices = @transform_5, window_bounds = array<i64: 1>}, {transform_indices = @transform_6, window_bounds = array<i64: 1, 16, 256>}]} {
    %c0_i32 = arith.constant 0 : i32
    %0 = arith.cmpi eq, %arg2, %c0_i32 : i32
    %1 = arith.extui %0 : i1 to i32
    %c0_i32_0 = arith.constant 0 : i32
    %2 = arith.cmpi ne, %1, %c0_i32_0 : i32
    scf.if %2 {
      %cst_26 = arith.constant 0xFF800000 : f32
      %36 = vector.broadcast %cst_26 : f32 to vector<1x256xf32>
      %c0_27 = arith.constant 0 : index
      %c0_28 = arith.constant 0 : index
      %37 = vector.load %arg10[%c0_27, %c0_28] : memref<1x256xf32, #tpu.memory_space<vmem>>, vector<1x256xf32>
      tpu.vector_store %arg10[%c0_27, %c0_28], %36 {strides = array<i32>} : memref<1x256xf32, #tpu.memory_space<vmem>>, vector<1x256xf32>,
      %cst_29 = arith.constant 0.000000e+00 : f32
      %38 = vector.broadcast %cst_29 : f32 to vector<1x256xf32>
      %c0_30 = arith.constant 0 : index
      %c0_31 = arith.constant 0 : index
      %39 = vector.load %arg11[%c0_30, %c0_31] : memref<1x256xf32, #tpu.memory_space<vmem>>, vector<1x256xf32>
      tpu.vector_store %arg11[%c0_30, %c0_31], %38 {strides = array<i32>} : memref<1x256xf32, #tpu.memory_space<vmem>>, vector<1x256xf32>,
      %cst_32 = arith.constant 0.000000e+00 : f32
      %40 = vector.broadcast %cst_32 : f32 to vector<16x256xf32>
      %c0_33 = arith.constant 0 : index
      %c0_34 = arith.constant 0 : index
      %41 = vector.load %arg12[%c0_33, %c0_34] : memref<16x256xf32, #tpu.memory_space<vmem>>, vector<16x256xf32>
      tpu.vector_store %arg12[%c0_33, %c0_34], %40 {strides = array<i32>} : memref<16x256xf32, #tpu.memory_space<vmem>>, vector<16x256xf32>,
    } else {
    }
    %c0 = arith.constant 0 : index
    %c0_1 = arith.constant 0 : index
    %c0_2 = arith.constant 0 : index
    %3 = vector.load %arg4[%c0, %c0_1, %c0_2] : memref<1x2x256xbf16, #tpu.memory_space<vmem>>, vector<1x2x256xbf16>
    %4 = vector.shape_cast %3 : vector<1x2x256xbf16> to vector<2x256xbf16>
    %c0_3 = arith.constant 0 : index
    %c0_4 = arith.constant 0 : index
    %c0_5 = arith.constant 0 : index
    %5 = vector.load %arg5[%c0_3, %c0_4, %c0_5] : memref<1x2x256xbf16, #tpu.memory_space<vmem>>, vector<1x2x256xbf16>
    %6 = vector.shape_cast %5 : vector<1x2x256xbf16> to vector<2x256xbf16>
    %c0_6 = arith.constant 0 : index
    %c0_7 = arith.constant 0 : index
    %c0_8 = arith.constant 0 : index
    %7 = vector.load %arg6[%c0_6, %c0_7, %c0_8] : memref<1x16x256xbf16, #tpu.memory_space<vmem>>, vector<1x16x256xbf16>
    %8 = vector.shape_cast %7 : vector<1x16x256xbf16> to vector<16x256xbf16>
    %cst = arith.constant dense<0.000000e+00> : vector<256x256xf32>
    %9 = tpu.matmul %6, %4, %cst {dimension_numbers = #tpu.dot_dimension_numbers<[0], [0], [1], [1], [0, 1, 1, 1], [], []>} : vector<2x256xbf16>, vector<2x256xbf16>, vector<256x256xf32> -> vector<256x256xf32>
    %c0_9 = arith.constant 0 : index
    %c0_10 = arith.constant 0 : index
    %10 = vector.load %arg10[%c0_9, %c0_10] : memref<1x256xf32, #tpu.memory_space<vmem>>, vector<1x256xf32>
    %cst_11 = arith.constant dense<0xFF800000> : vector<256xf32>
    %11 = vector.multi_reduction <maximumf>, %9, %cst_11 [0] : vector<256x256xf32> to vector<256xf32>
    %12 = vector.shape_cast %11 : vector<256xf32> to vector<1x256xf32>
    %13 = arith.maximumf %10, %12 : vector<1x256xf32>
    %14 = arith.subf %10, %13 : vector<1x256xf32>
    %15 = math.exp %14 : vector<1x256xf32>
    %16 = vector.broadcast %13 : vector<1x256xf32> to vector<256x256xf32>
    %17 = arith.subf %9, %16 : vector<256x256xf32>
    %18 = math.exp %17 : vector<256x256xf32>
    %c0_12 = arith.constant 0 : index
    %c0_13 = arith.constant 0 : index
    %19 = vector.load %arg11[%c0_12, %c0_13] : memref<1x256xf32, #tpu.memory_space<vmem>>, vector<1x256xf32>
    %20 = arith.mulf %15, %19 : vector<1x256xf32>
    %cst_14 = arith.constant dense<0.000000e+00> : vector<256xf32>
    %21 = vector.multi_reduction <add>, %18, %cst_14 [0] : vector<256x256xf32> to vector<256xf32>
    %22 = vector.shape_cast %21 : vector<256xf32> to vector<1x256xf32>
    %23 = arith.addf %20, %22 : vector<1x256xf32>
    %c0_15 = arith.constant 0 : index
    %c0_16 = arith.constant 0 : index
    %24 = vector.load %arg11[%c0_15, %c0_16] : memref<1x256xf32, #tpu.memory_space<vmem>>, vector<1x256xf32>
    tpu.vector_store %arg11[%c0_15, %c0_16], %23 {strides = array<i32>} : memref<1x256xf32, #tpu.memory_space<vmem>>, vector<1x256xf32>,
    %25 = arith.truncf %18 : vector<256x256xf32> to vector<256x256xbf16>
    %cst_17 = arith.constant dense<0.000000e+00> : vector<16x256xf32>
    %26 = tpu.matmul %8, %25, %cst_17 {dimension_numbers = #tpu.dot_dimension_numbers<[1], [0], [0], [1], [0, 0, 1, 1], [], []>} : vector<16x256xbf16>, vector<256x256xbf16>, vector<16x256xf32> -> vector<16x256xf32>
    %c0_18 = arith.constant 0 : index
    %c0_19 = arith.constant 0 : index
    %27 = vector.load %arg12[%c0_18, %c0_19] : memref<16x256xf32, #tpu.memory_space<vmem>>, vector<16x256xf32>
    %28 = vector.broadcast %15 : vector<1x256xf32> to vector<16x256xf32>
    %29 = arith.mulf %28, %27 : vector<16x256xf32>
    %30 = arith.addf %29, %26 : vector<16x256xf32>
    %c0_20 = arith.constant 0 : index
    %c0_21 = arith.constant 0 : index
    %31 = vector.load %arg12[%c0_20, %c0_21] : memref<16x256xf32, #tpu.memory_space<vmem>>, vector<16x256xf32>
    tpu.vector_store %arg12[%c0_20, %c0_21], %30 {strides = array<i32>} : memref<16x256xf32, #tpu.memory_space<vmem>>, vector<16x256xf32>,
    %c0_22 = arith.constant 0 : index
    %c0_23 = arith.constant 0 : index
    %32 = vector.load %arg10[%c0_22, %c0_23] : memref<1x256xf32, #tpu.memory_space<vmem>>, vector<1x256xf32>
    tpu.vector_store %arg10[%c0_22, %c0_23], %13 {strides = array<i32>} : memref<1x256xf32, #tpu.memory_space<vmem>>, vector<1x256xf32>,
    %c0_i32_24 = arith.constant 0 : i32
    %33 = arith.cmpi eq, %arg2, %c0_i32_24 : i32
    %34 = arith.extui %33 : i1 to i32
    %c0_i32_25 = arith.constant 0 : i32
    %35 = arith.cmpi ne, %34, %c0_i32_25 : i32
    scf.if %35 {
      %c0_26 = arith.constant 0 : index
      %c0_27 = arith.constant 0 : index
      %36 = vector.load %arg11[%c0_26, %c0_27] : memref<1x256xf32, #tpu.memory_space<vmem>>, vector<1x256xf32>
      %37 = tpu.reciprocal %36 : vector<1x256xf32> -> vector<1x256xf32>
      %c0_28 = arith.constant 0 : index
      %38 = memref.load %arg7[%c0_28] : memref<1xf32, #tpu.memory_space<smem>>
      %c0_29 = arith.constant 0 : index
      %c0_30 = arith.constant 0 : index
      %39 = vector.load %arg12[%c0_29, %c0_30] : memref<16x256xf32, #tpu.memory_space<vmem>>, vector<16x256xf32>
      %40 = vector.broadcast %37 : vector<1x256xf32> to vector<16x256xf32>
      %41 = arith.mulf %39, %40 : vector<16x256xf32>
      %42 = vector.broadcast %38 : f32 to vector<16x256xf32>
      %43 = arith.mulf %42, %41 : vector<16x256xf32>
      %c0_31 = arith.constant 0 : index
      %c0_32 = arith.constant 0 : index
      %c0_33 = arith.constant 0 : index
      %44 = vector.load %arg3[%c0_31, %c0_32, %c0_33] : memref<1x16x256xf32, #tpu.memory_space<vmem>>, vector<1x16x256xf32>
      %45 = vector.shape_cast %44 : vector<1x16x256xf32> to vector<16x256xf32>
      %46 = arith.addf %43, %45 : vector<16x256xf32>
      %c0_34 = arith.constant 0 : index
      %c0_35 = arith.constant 0 : index
      %c0_36 = arith.constant 0 : index
      %47 = vector.load %arg9[%c0_34, %c0_35, %c0_36] : memref<1x16x256xf32, #tpu.memory_space<vmem>>, vector<1x16x256xf32>
      %48 = vector.shape_cast %47 : vector<1x16x256xf32> to vector<16x256xf32>
      %49 = vector.shape_cast %46 : vector<16x256xf32> to vector<1x16x256xf32>
      tpu.vector_store %arg9[%c0_34, %c0_35, %c0_36], %49 {strides = array<i32>} : memref<1x16x256xf32, #tpu.memory_space<vmem>>, vector<1x16x256xf32>,
    } else {
    }
    return
  }
  func.func @transform_0(%arg0: i32, %arg1: i32, %arg2: i32) -> (i32, i32, i32) {
    %c0_i32 = arith.constant 0 : i32
    %c0_i32_0 = arith.constant 0 : i32
    return %arg0, %c0_i32, %arg1 : i32, i32, i32
  }
  func.func @transform_1(%arg0: i32, %arg1: i32, %arg2: i32) -> (i32, i32, i32) {
    %c0_i32 = arith.constant 0 : i32
    %c0_i32_0 = arith.constant 0 : i32
    return %arg0, %c0_i32, %arg1 : i32, i32, i32
  }
  func.func @transform_2(%arg0: i32, %arg1: i32, %arg2: i32) -> (i32, i32, i32) {
    %c0_i32 = arith.constant 0 : i32
    %c0_i32_0 = arith.constant 0 : i32
    return %arg0, %c0_i32, %arg2 : i32, i32, i32
  }
  func.func @transform_3(%arg0: i32, %arg1: i32, %arg2: i32) -> (i32, i32, i32) {
    %c0_i32 = arith.constant 0 : i32
    %c0_i32_0 = arith.constant 0 : i32
    return %arg0, %c0_i32, %arg2 : i32, i32, i32
  }
  func.func @transform_4(%arg0: i32, %arg1: i32, %arg2: i32) -> i32 {
    %c0_i32 = arith.constant 0 : i32
    %c0_i32_0 = arith.constant 0 : i32
    return %c0_i32 : i32
  }
  func.func @transform_5(%arg0: i32, %arg1: i32, %arg2: i32) -> i32 {
    %c0_i32 = arith.constant 0 : i32
    %c0_i32_0 = arith.constant 0 : i32
    return %c0_i32 : i32
  }
  func.func @transform_6(%arg0: i32, %arg1: i32, %arg2: i32) -> (i32, i32, i32) {
    %c0_i32 = arith.constant 0 : i32
    %c0_i32_0 = arith.constant 0 : i32
    return %arg0, %c0_i32, %arg1 : i32, i32, i32
  }
}

</mosaic_0001>

<bundles_post_ra>
// kernel: self_attn_pallas.1
= control target key start
LH: loop header
LB: loop body
LE: loop exit
PB: predicated region body
PF: predicated region fallthrough
CT: control target
= control target key end

     0   :  { %s1711_s23 = smov 0   ;;  %s1713_s24 = smov 0   ;;  %s2450_s0 = inlined_call_operand.vmem [shape: f32[2,16,256], index: 0, kind: input, shape index: {}]   ;;  %s2451_s1 = inlined_call_operand.vmem [shape: bf16[2,2,256], index: 1, kind: input, shape index: {}]   ;;  %s2452_s2 = inlined_call_operand.vmem [shape: bf16[2,2,256], index: 2, kind: input, shape index: {}]   ;;  %s2453_s3 = inlined_call_operand.vmem [shape: bf16[2,16,256], index: 3, kind: input, shape index: {}]   ;;  %s2454_s4 = inlined_call_operand.<no memory space> [shape: f32[1], index: 4, kind: input, shape index: {}]   ;;  %s2455_s5 = inlined_call_operand.<no memory space> [shape: s32[1], index: 5, kind: input, shape index: {}]   ;;  %s2456_s6 = inlined_call_operand.vmem [shape: f32[2,16,256], index: 6, kind: output, shape index: {}]  }
   0x1   :  { %11 = sst [smem:[#allocation5]] %s2454_s4  ;;  %s1715_s25 = smov 0  }
   0x2 LB: > { %s37_s4 = sadd.s32 1, %s1663_s24  ;;  %p1447_p0 = scmp.ge.s32.totalorder %s1667_s25, 1  ;;  %s1667_s25 = sphi %s1715_s25, %s18_s25   ;;  %s1663_s24 = sphi %s1713_s24, %s2600_s24   ;;  %s1659_s23 = sphi %s1711_s23, %s2599_s23  }
   0x3   : > { %p39_p1 = scmp.ge.s32.totalorder %s37_s4, 2  ;;  %p291_p2 = scmp.lt.s32.totalorder %s1667_s25, 3 }
   0x5   : > { %s2602_s4 = smov (%p39_p1, %s37_s4), 0  ;;  %p292_p3 = pnand %p1447_p0, %p291_p2 }
   0x7   : > { %295 = sbr.rel (%p292_p3) target bundleno = 790 (0x316), region = 44 }
   0xc   : > { %p355_p4 = scmp.lt.s32.totalorder %s1659_s23, 1  ;;  %v407_v0 = vlaneseq  ;;  %v1669_v1 = vmov 1966171168   ;;  %v1670_v3 = vmov 0   ;;  %vm550_vm0 = vcmask 1040384   ;;  %s1268_s12 = sld [smem:[#allocation5]] }
   0xd   : > { %v431_v2 = vunpack.c.l.s4 %v1669_v1  ;;  %589 = vmatprep.mubr.bf16.mxu0 %v1670_v3  ;;  %vm501_vm1 = vcmask 15360   ;;  %v2508_v38 = vmov 0  ;;  %v1671_v40 = vmov -inf  }
   0xe   : > { %s2604_s23 = smov (!%p355_p4, %s1659_s23), 1  ;;  %v1733_v4 = vshrl.u32 %v407_v0, 7  ;;  %vm1793_vm2 = vcmp.lt.s32.totalorder %v407_v0, 256  ;;  %v1672_v41 = vmov 0.0  }
   0xf   : > { %v432_v5 = vunpack.c.0.s8 %v431_v2  ;;  %s1450_s5 = sshll.u32 %s2604_s23, 1  ;;  %v2509_v38 = vsel %vm1793_vm2, 4294967295, %v2508_v38  ;;  %411 = vst.msk [vmem:[#allocation2] sm:$0x3] %vm1793_vm2, %v1671_v40  ;;  %412 = vst.msk [vmem:[#allocation3] sm:$0x3] %vm1793_vm2, %v1672_v41 }
  0x10   : > { %s380_s28 = scalar_lea.vmem %s2452_s2, %s1450_s5  ;;  %s371_s7 = scalar_lea.vmem %s2451_s1, %s1450_s5  ;;  %2510 = vst [vmem:[#allocation9_spill] sm:$0xff] %v2509_v38 }
  0x11   : > { %v1740_v6 = vsub.s32 %v432_v5, %v1733_v4  ;;  %v1456_v7 = vld.sshfl [vmem:[%s380_s28] sm:$0x11 pattern:$0x75316420]  ;;  %s1480_s8 = sshll.u32 %s2604_s23, 4  ;;  %s1479_s13 = sshll.u32 %s2604_s23, 5 }
  0x12   : > { %v1457_v9 = vld.sshfl [vmem:[%s371_s7] sm:$0x11 pattern:$0x75316420]  ;;  %v429_v14 = vcombine.high %v1456_v7, %v1456_v7  ;;  %s1997_s11 = scalar_lea.vmem %s2453_s3, %s1480_s8  ;;  %s362_s16 = scalar_lea.vmem %s2450_s0, %s1479_s13 }
  0x13   : > { %2506 = vst [vmem:[#allocation7_spill] sm:$0xff] %v1740_v6  ;;  %v436_v8 = vrot.slane %v1456_v7, %v1740_v6  ;;  %v486_v10 = vcombine.high %v1457_v9, %v1457_v9  ;;  %v493_v11 = vrot.slane %v1457_v9, %v1740_v6  ;;  %s400_s19 = scalar_lea.vmem %s2456_s6, %s1479_s13 }
  0x14   : > { %v443_v15 = vrot.slane %v429_v14, %v1740_v6 }
  0x15   : > { %446 = vxpose.xlu0.c.b16.start.end [1/1] (short) %v436_v8, 128  ;;  %v500_v12 = vrot.slane %v486_v10, %v1740_v6  ;;  %v552_v13 = vsel %vm550_vm0, %v493_v11, 0 }
  0x17   : > { %1458 = vmatprep.subr.msk.bf16.mxu0 %vm550_vm0, %v500_v12 }
  0x18   : > { %572 = vmatpush1.bf16.msra.mxu0 %v552_v13 }
  0x32   : > { %462 = vxpose.xlu0.c.b16.start.end [1/1] (short) %v443_v15, 128 }
  0x77   : > { %v454_v16 = vpop.trf.xlu0 }
  0x78   : > { %1459 = vmatmul.mubr.msk.bf16.vlgmr.msra.gmra.mxu0 %vm501_vm1, %v454_v16 }
  0x79   : > { %599 = vmatprep.mubr.bf16.mxu0 %v1670_v3 }
  0x7b   : > { %v455_v17 = vpop.trf.xlu0 }
  0x7f   : > { %v456_v18 = vpop.trf.xlu0 }
  0x80   : > { %1460 = vmatmul.mubr.msk.bf16.gmra.mxu0 %vm501_vm1, %v455_v17 }
  0x81   : > { %609 = vmatprep.mubr.bf16.mxu0 %v1670_v3 }
  0x83   : > { %v457_v19 = vpop.trf.xlu0 }
  0x87   : > { %v458_v20 = vpop.trf.xlu0 }
  0x88   : > { %1461 = vmatmul.mubr.msk.bf16.gmra.mxu0 %vm501_vm1, %v456_v18 }
  0x89   : > { %619 = vmatprep.mubr.bf16.mxu0 %v1670_v3 }
  0x8b   : > { %v459_v21 = vpop.trf.xlu0 }
  0x8f   : > { %v460_v22 = vpop.trf.xlu0 }
  0x90   : > { %1462 = vmatmul.mubr.msk.bf16.gmra.mxu0 %vm501_vm1, %v457_v19 }
  0x91   : > { %629 = vmatprep.mubr.bf16.mxu0 %v1670_v3 }
  0x93   : > { %v461_v23 = vpop.trf.xlu0 }
  0x97   : > { %v470_v24 = vpop.trf.xlu0 }
  0x98   : > { %1463 = vmatmul.mubr.msk.bf16.gmra.mxu0 %vm501_vm1, %v458_v20 }
  0x99   : > { %639 = vmatprep.mubr.bf16.mxu0 %v1670_v3 }
  0x9b   : > { %v471_v25 = vpop.trf.xlu0 }
  0x9f   : > { %v472_v26 = vpop.trf.xlu0 }
  0xa0   : > { %1464 = vmatmul.mubr.msk.bf16.gmra.mxu0 %vm501_vm1, %v459_v21 }
  0xa1   : > { %649 = vmatprep.mubr.bf16.mxu0 %v1670_v3 }
  0xa3   : > { %v473_v27 = vpop.trf.xlu0 }
  0xa7   : > { %v474_v28 = vpop.trf.xlu0 }
  0xa8   : > { %1465 = vmatmul.mubr.msk.bf16.gmra.mxu0 %vm501_vm1, %v460_v22 }
  0xa9   : > { %659 = vmatprep.mubr.bf16.mxu0 %v1670_v3 }
  0xab   : > { %v475_v29 = vpop.trf.xlu0 }
  0xaf   : > { %v476_v30 = vpop.trf.xlu0 }
  0xb0   : > { %1466 = vmatmul.mubr.msk.bf16.gmra.mxu0 %vm501_vm1, %v461_v23 }
  0xb1   : > { %669 = vmatprep.mubr.bf16.mxu0 %v1670_v3 }
  0xb3   : > { %v477_v31 = vpop.trf.xlu0 }
  0xb8   : > { %1467 = vmatmul.mubr.msk.bf16.gmra.mxu0 %vm501_vm1, %v470_v24 }
  0xb9   : > { %679 = vmatprep.mubr.bf16.mxu0 %v1670_v3 }
  0xc0   : > { %1468 = vmatmul.mubr.msk.bf16.gmra.mxu0 %vm501_vm1, %v471_v25 }
  0xc1   : > { %689 = vmatprep.mubr.bf16.mxu0 %v1670_v3 }
  0xc8   : > { %1469 = vmatmul.mubr.msk.bf16.gmra.mxu0 %vm501_vm1, %v472_v26 }
  0xc9   : > { %699 = vmatprep.mubr.bf16.mxu0 %v1670_v3 }
  0xd0   : > { %1470 = vmatmul.mubr.msk.bf16.gmra.mxu0 %vm501_vm1, %v473_v27 }
  0xd1   : > { %709 = vmatprep.mubr.bf16.mxu0 %v1670_v3 }
  0xd8   : > { %1471 = vmatmul.mubr.msk.bf16.gmra.mxu0 %vm501_vm1, %v474_v28 }
  0xd9   : > { %719 = vmatprep.mubr.bf16.mxu0 %v1670_v3 }
  0xe0   : > { %1472 = vmatmul.mubr.msk.bf16.gmra.mxu0 %vm501_vm1, %v475_v29 }
  0xe1   : > { %729 = vmatprep.mubr.bf16.mxu0 %v1670_v3 }
  0xe8   : > { %1473 = vmatmul.mubr.msk.bf16.gmra.mxu0 %vm501_vm1, %v476_v30 }
  0xe9   : > { %739 = vmatprep.mubr.bf16.mxu0 %v1670_v3 }
  0xf0   : > { %1474 = vmatmul.mubr.msk.bf16.gmra.mxu0 %vm501_vm1, %v477_v31 }
 0x138   : > { %v1780_v32 = vpop.f32.mrf.mxu0 }
 0x13a   : > { %v1782_v33 = vpop.f32.mrf.mxu0 }
 0x13c   : > { %v1784_v34 = vpop.f32.mrf.mxu0 }
 0x13e   : > { %v1786_v35 = vpop.f32.mrf.mxu0 }
 0x140   : > { %v1788_v36 = vpop.f32.mrf.mxu0 }
 0x141   : > { %v751_v22 = vmax.f32 %v1780_v32, %v1788_v36 }
 0x142   : > { %v1790_v37 = vpop.f32.mrf.mxu0 }
 0x143   : > { %2507 = vst [vmem:[#allocation8_spill] sm:$0xff] %v1790_v37  ;;  %v788_v25 = vmax.f32 %v1782_v33, %v1790_v37 }
 0x144   : > { %v1797_v39 = vpop.f32.mrf.mxu0 }
 0x145   : > { %2511 = vst [vmem:[#allocation10_spill] sm:$0xff] %v1797_v39  ;;  %v752_v23 = vmax.f32 %v1784_v34, %v1797_v39 }
 0x146   : > { %v1803_v42 = vpop.f32.mrf.mxu0 }
 0x147   : > { %2512 = vst [vmem:[#allocation11_spill] sm:$0xff] %v1803_v42  ;;  %v789_v26 = vmax.f32 %v1786_v35, %v1803_v42 }
 0x148   : > { %v1805_v43 = vpop.f32.mrf.mxu0 }
 0x149   : > { %v753_v27 = vmax.f32 %v751_v22, %v1805_v43 }
 0x14a   : > { %v1807_v44 = vpop.f32.mrf.mxu0 }
 0x14b   : > { %v790_v30 = vmax.f32 %v788_v25, %v1807_v44 }
 0x14c   : > { %v1809_v45 = vpop.f32.mrf.mxu0 }
 0x14d   : > { %2513 = vst [vmem:[#allocation12_spill] sm:$0xff] %v1809_v45  ;;  %v754_v28 = vmax.f32 %v752_v23, %v1809_v45 }
 0x14e   : > { %v1811_v46 = vpop.f32.mrf.mxu0 }
 0x14f   : > { %v791_v31 = vmax.f32 %v789_v26, %v1811_v46 }
 0x150   : > { %v1813_v47 = vpop.f32.mrf.mxu0 }
 0x151   : > { %v755_v40 = vmax.f32 %v753_v27, %v1813_v47 }
 0x152   : > { %v1815_v48 = vpop.f32.mrf.mxu0 }
 0x153   : > { %v792_v37 = vmax.f32 %v790_v30, %v1815_v48 }
 0x154   : > { %v1817_v49 = vpop.f32.mrf.mxu0 }
 0x155   : > { %2514 = vst [vmem:[#allocation13_spill] sm:$0xff] %v1817_v49  ;;  %v756_v41 = vmax.f32 %v754_v28, %v1817_v49 }
 0x156   : > { %v1819_v50 = vpop.f32.mrf.mxu0 }
 0x157   : > { %v793_v42 = vmax.f32 %v791_v31, %v1819_v50 }
 0x158   : > { %v1821_v51 = vpop.f32.mrf.mxu0 }
 0x159   : > { %v757_v22 = vmax.f32 %v755_v40, %v1821_v51 }
 0x15a   : > { %v1823_v52 = vpop.f32.mrf.mxu0 }
 0x15b   : > { %v794_v25 = vmax.f32 %v792_v37, %v1823_v52 }
 0x15c   : > { %v1825_v53 = vpop.f32.mrf.mxu0 }
 0x15d   : > { %2515 = vst [vmem:[#allocation14_spill] sm:$0xff] %v1825_v53  ;;  %v758_v23 = vmax.f32 %v756_v41, %v1825_v53 }
 0x15e   : > { %v1827_v54 = vpop.f32.mrf.mxu0 }
 0x15f   : > { %v795_v26 = vmax.f32 %v793_v42, %v1827_v54 }
 0x160   : > { %v1829_v55 = vpop.f32.mrf.mxu0 }
 0x161   : > { %v759_v27 = vmax.f32 %v757_v22, %v1829_v55 }
 0x162   : > { %v1831_v56 = vpop.f32.mrf.mxu0 }
 0x163   : > { %v796_v30 = vmax.f32 %v794_v25, %v1831_v56 }
 0x164   : > { %v1833_v57 = vpop.f32.mrf.mxu0 }
 0x165   : > { %2516 = vst [vmem:[#allocation15_spill] sm:$0xff] %v1833_v57  ;;  %v760_v28 = vmax.f32 %v758_v23, %v1833_v57 }
 0x166   : > { %v1835_v58 = vpop.f32.mrf.mxu0 }
 0x167   : > { %v797_v31 = vmax.f32 %v795_v26, %v1835_v58 }
 0x168   : > { %v1837_v59 = vpop.f32.mrf.mxu0 }
 0x169   : > { %v761_v40 = vmax.f32 %v759_v27, %v1837_v59 }
 0x16a   : > { %v1839_v60 = vpop.f32.mrf.mxu0 }
 0x16b   : > { %v798_v37 = vmax.f32 %v796_v30, %v1839_v60 }
 0x16c   : > { %v1841_v61 = vpop.f32.mrf.mxu0 }
 0x16d   : > { %2517 = vst [vmem:[#allocation16_spill] sm:$0xff] %v1841_v61  ;;  %v762_v41 = vmax.f32 %v760_v28, %v1841_v61 }
 0x16e   : > { %v1843_v62 = vpop.f32.mrf.mxu0 }
 0x16f   : > { %v799_v42 = vmax.f32 %v797_v31, %v1843_v62 }
 0x170   : > { %v1845_v63 = vpop.f32.mrf.mxu0 }
 0x171   : > { %v763_v22 = vmax.f32 %v761_v40, %v1845_v63 }
 0x172   : > { %v1847_v0 = vpop.f32.mrf.mxu0 }
 0x173   : > { %v800_v25 = vmax.f32 %v798_v37, %v1847_v0 }
 0x174   : > { %v1849_v1 = vpop.f32.mrf.mxu0 }
 0x175   : > { %2518 = vst [vmem:[#allocation17_spill] sm:$0xff] %v1849_v1  ;;  %v764_v23 = vmax.f32 %v762_v41, %v1849_v1 }
 0x176   : > { %v1851_v2 = vpop.f32.mrf.mxu0 }
 0x177   : > { %v801_v26 = vmax.f32 %v799_v42, %v1851_v2 }
 0x178   : > { %v1853_v3 = vpop.f32.mrf.mxu0 }
 0x179   : > { %v765_v27 = vmax.f32 %v763_v22, %v1853_v3 }
 0x17a   : > { %v1855_v5 = vpop.f32.mrf.mxu0 }
 0x17b   : > { %v802_v30 = vmax.f32 %v800_v25, %v1855_v5 }
 0x17c   : > { %v1857_v7 = vpop.f32.mrf.mxu0 }
 0x17d   : > { %2519 = vst [vmem:[#allocation18_spill] sm:$0xff] %v1857_v7  ;;  %v766_v28 = vmax.f32 %v764_v23, %v1857_v7 }
 0x17e   : > { %v1859_v8 = vpop.f32.mrf.mxu0 }
 0x17f   : > { %v803_v31 = vmax.f32 %v801_v26, %v1859_v8 }
 0x180   : > { %v1861_v9 = vpop.f32.mrf.mxu0 }
 0x181   : > { %v767_v40 = vmax.f32 %v765_v27, %v1861_v9 }
 0x182   : > { %v1863_v10 = vpop.f32.mrf.mxu0 }
 0x183   : > { %v804_v37 = vmax.f32 %v802_v30, %v1863_v10 }
 0x184   : > { %v1865_v11 = vpop.f32.mrf.mxu0 }
 0x185   : > { %2520 = vst [vmem:[#allocation19_spill] sm:$0xff] %v1865_v11  ;;  %v768_v41 = vmax.f32 %v766_v28, %v1865_v11 }
 0x186   : > { %v1867_v12 = vpop.f32.mrf.mxu0 }
 0x187   : > { %v805_v42 = vmax.f32 %v803_v31, %v1867_v12 }
 0x188   : > { %v1869_v13 = vpop.f32.mrf.mxu0 }
 0x189   : > { %v769_v22 = vmax.f32 %v767_v40, %v1869_v13 }
 0x18a   : > { %v1871_v14 = vpop.f32.mrf.mxu0 }
 0x18b   : > { %v806_v25 = vmax.f32 %v804_v37, %v1871_v14 }
 0x18c   : > { %v1873_v15 = vpop.f32.mrf.mxu0 }
 0x18d   : > { %2521 = vst [vmem:[#allocation20_spill] sm:$0xff] %v1873_v15  ;;  %v770_v23 = vmax.f32 %v768_v41, %v1873_v15 }
 0x18e   : > { %v1875_v16 = vpop.f32.mrf.mxu0 }
 0x18f   : > { %v807_v26 = vmax.f32 %v805_v42, %v1875_v16 }
 0x190   : > { %v1877_v17 = vpop.f32.mrf.mxu0 }
 0x191   : > { %v771_v27 = vmax.f32 %v769_v22, %v1877_v17 }
 0x192   : > { %v1879_v18 = vpop.f32.mrf.mxu0 }
 0x193   : > { %v808_v30 = vmax.f32 %v806_v25, %v1879_v18 }
 0x194   : > { %v1881_v19 = vpop.f32.mrf.mxu0 }
 0x195   : > { %2522 = vst [vmem:[#allocation21_spill] sm:$0xff] %v1881_v19  ;;  %v772_v28 = vmax.f32 %v770_v23, %v1881_v19 }
 0x196   : > { %v1883_v20 = vpop.f32.mrf.mxu0 }
 0x197   : > { %v809_v31 = vmax.f32 %v807_v26, %v1883_v20 }
 0x198   : > { %v1885_v21 = vpop.f32.mrf.mxu0 }
 0x199   : > { %v773_v40 = vmax.f32 %v771_v27, %v1885_v21 }
 0x19a   : > { %v1891_v24 = vpop.f32.mrf.mxu0 }
 0x19b   : > { %v810_v37 = vmax.f32 %v808_v30, %v1891_v24 }
 0x19c   : > { %v1899_v29 = vpop.f32.mrf.mxu0 }
 0x19d   : > { %2523 = vst [vmem:[#allocation22_spill] sm:$0xff] %v1899_v29  ;;  %v774_v41 = vmax.f32 %v772_v28, %v1899_v29 }
 0x19e   : > { %v1905_v39 = vpop.f32.mrf.mxu0 }
 0x19f   : > { %v811_v42 = vmax.f32 %v809_v31, %v1905_v39 }
 0x1a0   : > { %v1911_v45 = vpop.f32.mrf.mxu0 }
 0x1a1   : > { %2524 = vst [vmem:[#allocation23_spill] sm:$0xff] %v1911_v45  ;;  %v775_v22 = vmax.f32 %v773_v40, %v1911_v45 }
 0x1a2   : > { %v1917_v49 = vpop.f32.mrf.mxu0 }
 0x1a3   : > { %2525 = vst [vmem:[#allocation24_spill] sm:$0xff] %v1917_v49  ;;  %v812_v25 = vmax.f32 %v810_v37, %v1917_v49 }
 0x1a4   : > { %v1923_v53 = vpop.f32.mrf.mxu0 }
 0x1a5   : > { %2526 = vst [vmem:[#allocation25_spill] sm:$0xff] %v1923_v53  ;;  %v776_v23 = vmax.f32 %v774_v41, %v1923_v53 }
 0x1a6   : > { %v1929_v57 = vpop.f32.mrf.mxu0 }
 0x1a7   : > { %2527 = vst [vmem:[#allocation26_spill] sm:$0xff] %v1929_v57  ;;  %v813_v26 = vmax.f32 %v811_v42, %v1929_v57 }
 0x1a8   : > { %v1935_v61 = vpop.f32.mrf.mxu0 }
 0x1a9   : > { %2528 = vst [vmem:[#allocation27_spill] sm:$0xff] %v1935_v61  ;;  %v777_v27 = vmax.f32 %v775_v22, %v1935_v61 }
 0x1aa   : > { %v1941_v1 = vpop.f32.mrf.mxu0 }
 0x1ab   : > { %2529 = vst [vmem:[#allocation28_spill] sm:$0xff] %v1941_v1  ;;  %v814_v30 = vmax.f32 %v812_v25, %v1941_v1 }
 0x1ac   : > { %v1947_v7 = vpop.f32.mrf.mxu0 }
 0x1ad   : > { %2530 = vst [vmem:[#allocation29_spill] sm:$0xff] %v1947_v7  ;;  %v778_v28 = vmax.f32 %v776_v23, %v1947_v7 }
 0x1ae   : > { %v1953_v11 = vpop.f32.mrf.mxu0 }
 0x1af   : > { %2531 = vst [vmem:[#allocation30_spill] sm:$0xff] %v1953_v11  ;;  %v815_v31 = vmax.f32 %v813_v26, %v1953_v11 }
 0x1b0   : > { %v1959_v15 = vpop.f32.mrf.mxu0 }
 0x1b1   : > { %2532 = vst [vmem:[#allocation31_spill] sm:$0xff] %v1959_v15  ;;  %v779_v40 = vmax.f32 %v777_v27, %v1959_v15 }
 0x1b2   : > { %v1965_v19 = vpop.f32.mrf.mxu0 }
 0x1b3   : > { %v816_v37 = vmax.f32 %v814_v30, %v1965_v19 }
 0x1b4   : > { %v1971_v29 = vpop.f32.mrf.mxu0 }
 0x1b5   : > { %2533 = vst [vmem:[#allocation32_spill] sm:$0xff] %v1971_v29  ;;  %v780_v41 = vmax.f32 %v778_v28, %v1971_v29 }
 0x1b6   : > { %v1977_v53 = vpop.f32.mrf.mxu0 }
 0x1b7   : > { %v781_v49 = vmax.f32 %v779_v40, %v780_v41  ;;  %v817_v42 = vmax.f32 %v815_v31, %v1977_v53  ;;  %v1982_v40 = vld [vmem:[#allocation2] sm:$0x3] }
 0x1b8   : > { %2534 = vst [vmem:[#allocation33_spill] sm:$0xff] %v1982_v40 }
 0x1b9   : > { %v782_v22 = vrot.slane %v781_v49, 4  ;;  %v818_v61 = vmax.f32 %v816_v37, %v817_v42  ;;  %v2538_v42 = vld [vmem:[#allocation8_spill] sm:$0xff] }
 0x1bb   : > { %v783_v23 = vmax.f32 %v781_v49, %v782_v22  ;;  %v819_v7 = vrot.slane %v818_v61, 4 }
 0x1bd   : > { %v784_v57 = vrot.slane %v783_v23, 2  ;;  %v820_v25 = vmax.f32 %v818_v61, %v819_v7 }
 0x1bf   : > { %v785_v1 = vmax.f32 %v783_v23, %v784_v57  ;;  %v821_v26 = vrot.slane %v820_v25, 2  ;;  %v2001_v57 = vsub.s32 0, %v1733_v4  ;;  %v2539_v23 = vld [vmem:[#allocation10_spill] sm:$0xff] }
 0x1c1   : > { %v786_v11 = vrot.slane %v785_v1, 1  ;;  %v822_v27 = vmax.f32 %v820_v25, %v821_v26  ;;  %2536 = vst [vmem:[#allocation35_spill] sm:$0xff] %v2001_v57 }
 0x1c3   : > { %v823_v15 = vrot.slane %v822_v27, 1  ;;  %v787_v28 = vmax.f32 %v785_v1, %v786_v11  ;;  %v2004_v1 = vsub.s32 1, %v1733_v4 }
 0x1c5   : > { %v824_v29 = vmax.f32 %v822_v27, %v823_v15  ;;  %2537 = vst [vmem:[#allocation36_spill] sm:$0xff] %v2004_v1  ;;  %v2540_v27 = vld [vmem:[#allocation11_spill] sm:$0xff] }
 0x1c7   : > { %v827_v45 = vcombine.low %v787_v28, %v824_v29 }
 0x1c9   : > { %v834_v30 = vrot.slane %v827_v45, %v1740_v6  ;;  %v1512_v45 = vld [vmem:[%s1997_s11 + $0x4] ss:$8 sps:$4 sm:$0xff]  }
 0x1ca   : > { %1224 = vmatprep.mubr.bf16.mxu1 %v1512_v45  ;;  %v2541_v45 = vld [vmem:[#allocation12_spill] sm:$0xff] }
 0x1cb   : > { %v841_v31 = vrot.slane %v834_v30, %v1740_v6 }
 0x1cd   : > { %v1986_v49 = vmax.f32 %v1982_v40, %v841_v31 }
 0x1cf   : > { %2535 = vst [vmem:[#allocation34_spill] sm:$0xff] %v1986_v49  ;;  %1262 = vst.msk [vmem:[#allocation2] sm:$0x3] %vm1793_vm2, %v1986_v49  ;;  %v2008_v7 = vrot.slane %v1986_v49, %v2001_v57  ;;  %v2012_v11 = vrot.slane %v1986_v49, %v2004_v1 }
 0x1d1   : > { %v858_v15 = vsub.f32 %v1780_v32, %v2008_v7  ;;  %v859_v29 = vsub.f32 %v1782_v33, %v2012_v11  ;;  %v860_v41 = vsub.f32 %v1784_v34, %v2008_v7  ;;  %v861_v4 = vsub.f32 %v1786_v35, %v2012_v11 }
 0x1d2   : > { %v862_v37 = vsub.f32 %v1788_v36, %v2008_v7  ;;  %v863_v22 = vsub.f32 %v2538_v42, %v2012_v11  ;;  %v864_v25 = vsub.f32 %v2539_v23, %v2008_v7  ;;  %v865_v33 = vsub.f32 %v2540_v27, %v2012_v11  ;;  %v2543_v27 = vld [vmem:[#allocation14_spill] sm:$0xff] }
 0x1d3   : > { %v922_v26 = vmul.f32 1.442695, %v858_v15  ;;  %v924_v32 = vmul.f32 1.442695, %v859_v29  ;;  %v926_v28 = vmul.f32 1.442695, %v860_v41  ;;  %v866_v34 = vsub.f32 %v1805_v43, %v2008_v7 }
 0x1d4   : > { %v928_v30 = vmul.f32 1.442695, %v861_v4  ;;  %v930_v35 = vmul.f32 1.442695, %v862_v37  ;;  %v867_v36 = vsub.f32 %v1807_v44, %v2012_v11  ;;  %v932_v31 = vmul.f32 1.442695, %v863_v22 }
 0x1d5   : > { %1513 = vpow2.f32 %v922_v26  ;;  %v868_v42 = vsub.f32 %v2541_v45, %v2008_v7  ;;  %v934_v15 = vmul.f32 1.442695, %v864_v25  ;;  %v869_v29 = vsub.f32 %v1811_v46, %v2012_v11  ;;  %v2542_v22 = vld [vmem:[#allocation13_spill] sm:$0xff] }
 0x1d6   : > { %1515 = vpow2.f32 %v924_v32  ;;  %v936_v41 = vmul.f32 1.442695, %v865_v33  ;;  %v870_v43 = vsub.f32 %v1813_v47, %v2008_v7  ;;  %v938_v4 = vmul.f32 1.442695, %v866_v34 }
 0x1d7   : > { %1517 = vpow2.f32 %v926_v28  ;;  %v871_v44 = vsub.f32 %v1815_v48, %v2012_v11  ;;  %v940_v37 = vmul.f32 1.442695, %v867_v36  ;;  %v872_v23 = vsub.f32 %v2542_v22, %v2008_v7 }
 0x1d8   : > { %1519 = vpow2.f32 %v928_v30  ;;  %v942_v25 = vmul.f32 1.442695, %v868_v42  ;;  %v873_v46 = vsub.f32 %v1819_v50, %v2012_v11  ;;  %v944_v26 = vmul.f32 1.442695, %v869_v29 }
 0x1d9   : > { %1521 = vpow2.f32 %v930_v35  ;;  %v874_v47 = vsub.f32 %v1821_v51, %v2008_v7  ;;  %v875_v32 = vsub.f32 %v1823_v52, %v2012_v11  ;;  %v946_v48 = vmul.f32 1.442695, %v870_v43  ;;  %v2544_v52 = vld [vmem:[#allocation15_spill] sm:$0xff] }
 0x1da   : > { %1523 = vpow2.f32 %v932_v31  ;;  %v876_v33 = vsub.f32 %v2543_v27, %v2008_v7  ;;  %v877_v28 = vsub.f32 %v1827_v54, %v2012_v11  ;;  %v948_v30 = vmul.f32 1.442695, %v871_v44  ;;  %v2548_v44 = vld [vmem:[#allocation17_spill] sm:$0xff] }
 0x1db   : > { %1525 = vpow2.f32 %v934_v15  ;;  %v878_v50 = vsub.f32 %v1829_v55, %v2008_v7  ;;  %v879_v34 = vsub.f32 %v1831_v56, %v2012_v11  ;;  %v950_v51 = vmul.f32 1.442695, %v872_v23  ;;  %v2546_v56 = vld [vmem:[#allocation16_spill] sm:$0xff] }
 0x1dc   : > { %1527 = vpow2.f32 %v936_v41  ;;  %v880_v35 = vsub.f32 %v2544_v52, %v2008_v7  ;;  %v881_v36 = vsub.f32 %v1835_v58, %v2012_v11  ;;  %v952_v31 = vmul.f32 1.442695, %v873_v46 }
 0x1dd   : > { %1529 = vpow2.f32 %v938_v4  ;;  %v882_v54 = vsub.f32 %v1837_v59, %v2008_v7  ;;  %v883_v45 = vsub.f32 %v1839_v60, %v2012_v11  ;;  %v954_v55 = vmul.f32 1.442695, %v874_v47 }
 0x1de   : > { %1531 = vpow2.f32 %v940_v37  ;;  %v884_v15 = vsub.f32 %v2546_v56, %v2008_v7  ;;  %v885_v29 = vsub.f32 %v1843_v62, %v2012_v11  ;;  %v956_v58 = vmul.f32 1.442695, %v875_v32 }
 0x1df   : > { %1533 = vpow2.f32 %v942_v25  ;;  %v886_v59 = vsub.f32 %v1845_v63, %v2008_v7  ;;  %v887_v60 = vsub.f32 %v1847_v0, %v2012_v11  ;;  %v958_v43 = vmul.f32 1.442695, %v876_v33 }
 0x1e0   : > { %1535 = vpow2.f32 %v944_v26  ;;  %v888_v37 = vsub.f32 %v2548_v44, %v2008_v7  ;;  %v889_v62 = vsub.f32 %v1851_v2, %v2012_v11  ;;  %v960_v22 = vmul.f32 1.442695, %v877_v28  ;;  %v2549_v26 = vld [vmem:[#allocation18_spill] sm:$0xff] }
 0x1e1   : > { %1537 = vpow2.f32 %v946_v48  ;;  %v890_v63 = vsub.f32 %v1853_v3, %v2008_v7  ;;  %v891_v0 = vsub.f32 %v1855_v5, %v2012_v11  ;;  %v962_v25 = vmul.f32 1.442695, %v878_v50 }
 0x1e2   : > { %v2066_v42 = vpop.eup %1513  ;;  %1539 = vpow2.f32 %v948_v30  ;;  %v892_v47 = vsub.f32 %v2549_v26, %v2008_v7  ;;  %v893_v2 = vsub.f32 %v1859_v8, %v2012_v11  ;;  %v964_v32 = vmul.f32 1.442695, %v879_v34  ;;  %v2550_v30 = vld [vmem:[#allocation19_spill] sm:$0xff] }
 0x1e3   : > { %2545 = vst [vmem:[#allocation8_spill] sm:$0xff] %v2066_v42  ;;  %v2072_v41 = vpop.eup %1515  ;;  %1541 = vpow2.f32 %v950_v51  ;;  %v894_v3 = vsub.f32 %v1861_v9, %v2008_v7  ;;  %v966_v33 = vmul.f32 1.442695, %v880_v35  ;;  %v968_v51 = vmul.f32 1.442695, %v881_v36 }
 0x1e4   : > { %v2078_v4 = vpop.eup %1517  ;;  %1543 = vpow2.f32 %v952_v31  ;;  %v970_v31 = vmul.f32 1.442695, %v882_v54  ;;  %v978_v54 = vmul.f32 1.442695, %v886_v59  ;;  %v982_v36 = vmul.f32 1.442695, %v888_v37 }
 0x1e5   : > { %2547 = vst [vmem:[#allocation10_spill] sm:$0xff] %v2078_v4  ;;  %v2084_v23 = vpop.eup %1519  ;;  %1545 = vpow2.f32 %v954_v55  ;;  %v1052_v34 = vadd.f32 %v2078_v4, %v2066_v42  ;;  %v984_v50 = vmul.f32 1.442695, %v889_v62  ;;  %v988_v62 = vmul.f32 1.442695, %v891_v0 }
 0x1e6   : > { %v2090_v46 = vpop.eup %1521  ;;  %1547 = vpow2.f32 %v956_v58  ;;  %v1089_v55 = vadd.f32 %v2084_v23, %v2072_v41  ;;  %v972_v58 = vmul.f32 1.442695, %v883_v45  ;;  %v976_v45 = vmul.f32 1.442695, %v885_v29 }
 0x1e7   : > { %v2096_v48 = vpop.eup %1523  ;;  %1549 = vpow2.f32 %v958_v43  ;;  %v1053_v43 = vadd.f32 %v2090_v46, %v1052_v34  ;;  %v992_v0 = vmul.f32 1.442695, %v893_v2  ;;  %v2554_v2 = vsub.f32 %v1863_v10, %v2012_v11 }
 0x1e8   : > { %v2102_v28 = vpop.eup %1525  ;;  %1551 = vpow2.f32 %v960_v22  ;;  %v974_v22 = vmul.f32 1.442695, %v884_v15 }
 0x1e9   : > { %v2108_v52 = vpop.eup %1527  ;;  %1553 = vpow2.f32 %v962_v25  ;;  %v1090_v25 = vadd.f32 %v2096_v48, %v1089_v55  ;;  %v1054_v34 = vadd.f32 %v2102_v28, %v1053_v43  ;;  %v2551_v55 = vld [vmem:[#allocation20_spill] sm:$0xff]  ;;  %v986_v43 = vmul.f32 1.442695, %v890_v63 }
 0x1ea   : > { %v2114_v56 = vpop.eup %1529  ;;  %1555 = vpow2.f32 %v964_v32  ;;  %v980_v32 = vmul.f32 1.442695, %v887_v60  ;;  %v990_v63 = vmul.f32 1.442695, %v892_v47  ;;  %v994_v47 = vmul.f32 1.442695, %v894_v3 }
 0x1eb   : > { %v2119_v44 = vpop.eup %1531  ;;  %1557 = vpow2.f32 %v966_v33  ;;  %v1091_v15 = vadd.f32 %v2108_v52, %v1090_v25  ;;  %v1055_v29 = vadd.f32 %v2114_v56, %v1054_v34  ;;  %v2555_v3 = vsub.f32 %v2550_v30, %v2008_v7 }
 0x1ec   : > { %v2124_v61 = vpop.eup %1533  ;;  %1559 = vpow2.f32 %v968_v51 }
 0x1ed   : > { %v2129_v35 = vpop.eup %1535  ;;  %1561 = vpow2.f32 %v970_v31  ;;  %v1092_v59 = vadd.f32 %v2119_v44, %v1091_v15  ;;  %v1056_v60 = vadd.f32 %v2124_v61, %v1055_v29  ;;  %v2552_v15 = vld [vmem:[#allocation21_spill] sm:$0xff] }
 0x1ee   : > { %v2134_v33 = vpop.eup %1537  ;;  %1563 = vpow2.f32 %v972_v58 }
 0x1ef   : > { %v2139_v51 = vpop.eup %1539  ;;  %1565 = vpow2.f32 %v974_v22  ;;  %v1093_v37 = vadd.f32 %v2129_v35, %v1092_v59 }
 0x1f0   : > { %v2144_v31 = vpop.eup %1541  ;;  %1567 = vpow2.f32 %v976_v45  ;;  %v1057_v45 = vadd.f32 %v2134_v33, %v1056_v60 }
 0x1f1   : > { %v2149_v58 = vpop.eup %1543  ;;  %1569 = vpow2.f32 %v978_v54  ;;  %v1094_v59 = vadd.f32 %v2139_v51, %v1093_v37 }
 0x1f2   : > { %v2154_v22 = vpop.eup %1545  ;;  %1571 = vpow2.f32 %v980_v32  ;;  %v1058_v32 = vadd.f32 %v2144_v31, %v1057_v45  ;;  %v996_v45 = vmul.f32 1.442695, %v2554_v2 }
 0x1f3   : > { %v2162_v29 = vpop.eup %1547  ;;  %1573 = vpow2.f32 %v982_v36  ;;  %v1095_v36 = vadd.f32 %v2149_v58, %v1094_v59 }
 0x1f4   : > { %v2170_v27 = vpop.eup %1549  ;;  %1575 = vpow2.f32 %v984_v50  ;;  %v2553_v50 = vld [vmem:[#allocation22_spill] sm:$0xff]  ;;  %v1059_v5 = vadd.f32 %v2154_v22, %v1058_v32  ;;  %v2557_v32 = vsub.f32 %v1867_v12, %v2012_v11  ;;  %v2572_v12 = vld [vmem:[#allocation31_spill] sm:$0xff] }
 0x1f5   : > { %v2178_v60 = vpop.eup %1551  ;;  %1577 = vpow2.f32 %v986_v43  ;;  %v998_v43 = vmul.f32 1.442695, %v2555_v3  ;;  %v1096_v59 = vadd.f32 %v2162_v29, %v1095_v36  ;;  %v2559_v36 = vsub.f32 %v1869_v13, %v2008_v7 }
 0x1f6   : > { %v2186_v37 = vpop.eup %1553  ;;  %1579 = vpow2.f32 %v988_v62  ;;  %v2556_v62 = vld [vmem:[#allocation23_spill] sm:$0xff]  ;;  %v1000_v2 = vmul.f32 1.442695, %v2557_v32  ;;  %v1060_v54 = vadd.f32 %v2170_v27, %v1059_v5  ;;  %v2561_v5 = vsub.f32 %v1871_v14, %v2012_v11 }
 0x1f7   : > { %v2194_v26 = vpop.eup %1555  ;;  %1581 = vpow2.f32 %v990_v63  ;;  %v2558_v63 = vld [vmem:[#allocation24_spill] sm:$0xff]  ;;  %v1002_v3 = vmul.f32 1.442695, %v2559_v36  ;;  %v1097_v34 = vadd.f32 %v2178_v60, %v1096_v59  ;;  %v2563_v13 = vsub.f32 %v2551_v55, %v2008_v7 }
 0x1f8   : > { %v2202_v8 = vpop.eup %1557  ;;  %1583 = vpow2.f32 %v992_v0  ;;  %v2560_v0 = vld [vmem:[#allocation25_spill] sm:$0xff]  ;;  %v1004_v32 = vmul.f32 1.442695, %v2561_v5  ;;  %v1061_v25 = vadd.f32 %v2186_v37, %v1060_v54  ;;  %v2565_v14 = vsub.f32 %v1875_v16, %v2012_v11 }
 0x1f9   : > { %v2210_v9 = vpop.eup %1559  ;;  %1585 = vpow2.f32 %v994_v47  ;;  %v2562_v47 = vld [vmem:[#allocation26_spill] sm:$0xff]  ;;  %v1006_v59 = vmul.f32 1.442695, %v2563_v13  ;;  %v1098_v36 = vadd.f32 %v2194_v26, %v1097_v34  ;;  %v2567_v55 = vsub.f32 %v1877_v17, %v2008_v7 }
 0x1fa   : > { %v2218_v10 = vpop.eup %1561  ;;  %1587 = vpow2.f32 %v996_v45  ;;  %v2564_v45 = vld [vmem:[#allocation27_spill] sm:$0xff]  ;;  %v1008_v54 = vmul.f32 1.442695, %v2565_v14  ;;  %v1062_v5 = vadd.f32 %v2202_v8, %v1061_v25  ;;  %v2569_v16 = vsub.f32 %v1879_v18, %v2012_v11 }
 0x1fb   : > { %v1564_v30 = vpop.eup %1563  ;;  %1589 = vpow2.f32 %v998_v43  ;;  %v2566_v43 = vld [vmem:[#allocation28_spill] sm:$0xff]  ;;  %v1010_v34 = vmul.f32 1.442695, %v2567_v55  ;;  %v1099_v13 = vadd.f32 %v2210_v9, %v1098_v36  ;;  %v2571_v17 = vsub.f32 %v2552_v15, %v2008_v7 }
 0x1fc   : > { %v2232_v57 = vpop.eup %1565  ;;  %1591 = vpow2.f32 %v1000_v2  ;;  %v2568_v2 = vld [vmem:[#allocation29_spill] sm:$0xff]  ;;  %v1012_v25 = vmul.f32 1.442695, %v2569_v16  ;;  %v1063_v14 = vadd.f32 %v2218_v10, %v1062_v5  ;;  %v2573_v18 = vsub.f32 %v1883_v20, %v2012_v11 }
 0x1fd   : > { %v1568_v1 = vpop.eup %1567  ;;  %1593 = vpow2.f32 %v1002_v3  ;;  %v2570_v3 = vld [vmem:[#allocation30_spill] sm:$0xff]  ;;  %v1014_v36 = vmul.f32 1.442695, %v2571_v17  ;;  %v1100_v55 = vadd.f32 %v1564_v30, %v1099_v13 }
 0x1fe   : > { %v1570_v6 = vpop.eup %1569  ;;  %1595 = vpow2.f32 %v1004_v32  ;;  %v1016_v16 = vmul.f32 1.442695, %v2573_v18  ;;  %v1064_v5 = vadd.f32 %v2232_v57, %v1063_v14 }
 0x1ff   : > { %v1572_v49 = vpop.eup %1571  ;;  %1597 = vpow2.f32 %v1006_v59  ;;  %v2574_v59 = vsub.f32 %v1885_v21, %v2008_v7  ;;  %v1101_v15 = vadd.f32 %v1568_v1, %v1100_v55  ;;  %v2576_v21 = vsub.f32 %v2553_v50, %v2008_v7 }
 0x200   : > { %v1574_v40 = vpop.eup %1573  ;;  %1599 = vpow2.f32 %v1008_v54  ;;  %v2575_v54 = vsub.f32 %v1891_v24, %v2012_v11  ;;  %v1065_v4 = vadd.f32 %v1570_v6, %v1064_v5  ;;  %v2577_v24 = vsub.f32 %v1905_v39, %v2012_v11 }
 0x201   : > { %v1576_v42 = vpop.eup %1575  ;;  %1601 = vpow2.f32 %v1010_v34  ;;  %v1018_v38 = vmul.f32 1.442695, %v2574_v59  ;;  %v1164_v17 = vpack.c.bf16 %v1574_v40, %v1570_v6  ;;  %v919_v34 = vsub.f32 %v1965_v19, %v2012_v11 }
 0x202   : > { %v2266_v13 = vpop.eup %1577  ;;  %1603 = vpow2.f32 %v1012_v25  ;;  %v1020_v32 = vmul.f32 1.442695, %v2575_v54  ;;  %v1165_v20 = vpack.c.bf16 %v1576_v42, %v1572_v49  ;;  %v1022_v14 = vmul.f32 1.442695, %v2576_v21 }
 0x203   : > { %v2271_v18 = vpop.eup %1579  ;;  %1605 = vpow2.f32 %v1014_v36  ;;  %v1102_v55 = vadd.f32 %v1572_v49, %v1101_v15  ;;  %v1024_v25 = vmul.f32 1.442695, %v2577_v24  ;;  %v1066_v6 = vadd.f32 %v1574_v40, %v1065_v4 }
 0x204   : > { %v2278_v59 = vpop.eup %1581  ;;  %1607 = vpow2.f32 %v1016_v16  ;;  %1192 = vmatprep.subr.bf16.mxu1 %v1165_v20  ;;  %v1163_v5 = vpack.c.bf16 %v1568_v1, %v1564_v30  ;;  %v2578_v19 = vsub.f32 %v2556_v62, %v2008_v7  ;;  %v2579_v39 = vsub.f32 %v2558_v63, %v2012_v11 }
 0x205   : > { %v2283_v54 = vpop.eup %1583  ;;  %1609 = vpow2.f32 %v1018_v38  ;;  %v1103_v50 = vadd.f32 %v1576_v42, %v1102_v55  ;;  %1193 = vmatpush1.bf16.msra.mxu1 %v1164_v17  ;;  %v1166_v49 = vpack.c.bf16 %v2278_v59, %v2266_v13  ;;  %v1067_v1 = vadd.f32 %v2266_v13, %v1066_v6 }
 0x206   : > { %v1026_v36 = vmul.f32 1.442695, %v2578_v19  ;;  %v2290_v16 = vpop.eup %1585  ;;  %1611 = vpow2.f32 %v1020_v32  ;;  %v1028_v40 = vmul.f32 1.442695, %v2579_v39  ;;  %1194 = vmatprep.subr.bf16.mxu1 %v1163_v5  ;;  %v1167_v38 = vpack.c.bf16 %v2283_v54, %v2271_v18 }
 0x207   : > { %v2298_v4 = vpop.eup %1587  ;;  %1613 = vpow2.f32 %v1022_v14  ;;  %v2580_v42 = vsub.f32 %v2560_v0, %v2008_v7  ;;  %v1104_v30 = vadd.f32 %v2271_v18, %v1103_v50  ;;  %v1162_v32 = vpack.c.bf16 %v2232_v57, %v2218_v10  ;;  %v2582_v0 = vld [vmem:[#allocation32_spill] sm:$0xff] }
 0x208   : > { %v2306_v63 = vpop.eup %1589  ;;  %1615 = vpow2.f32 %v1024_v25  ;;  %v2581_v15 = vsub.f32 %v2562_v47, %v2012_v11  ;;  %v1068_v20 = vadd.f32 %v2278_v59, %v1067_v1  ;;  %v1161_v21 = vpack.c.bf16 %v2210_v9, %v2194_v26 }
 0x209   : > { %v1030_v62 = vmul.f32 1.442695, %v2580_v42  ;;  %v2314_v14 = vpop.eup %1591  ;;  %v920_v55 = vsub.f32 %v2582_v0, %v2008_v7  ;;  %1617 = vpow2.f32 %v1026_v36  ;;  %v2583_v57 = vsub.f32 %v2564_v45, %v2008_v7  ;;  %1195 = vmatpush1.bf16.msra.mxu1 %v1162_v32 }
 0x20a   : > { %v1032_v17 = vmul.f32 1.442695, %v2581_v15  ;;  %v1105_v24 = vadd.f32 %v2283_v54, %v1104_v30  ;;  %v2322_v47 = vpop.eup %1593  ;;  %v921_v25 = vsub.f32 %v1977_v53, %v2012_v11  ;;  %1619 = vpow2.f32 %v1028_v40  ;;  %1196 = vmatprep.subr.bf16.mxu1 %v1161_v21 }
 0x20b   : > { %v1034_v10 = vmul.f32 1.442695, %v2583_v57  ;;  %v2584_v26 = vsub.f32 %v2566_v43, %v2012_v11  ;;  %v1069_v6 = vadd.f32 %v2290_v16, %v1068_v20  ;;  %v2330_v5 = vpop.eup %1595  ;;  %1621 = vpow2.f32 %v1030_v62 }
 0x20c   : > { %v2585_v45 = vsub.f32 %v2568_v2, %v2008_v7  ;;  %v1106_v36 = vadd.f32 %v2298_v4, %v1105_v24  ;;  %v1160_v53 = vpack.c.bf16 %v2202_v8, %v2186_v37  ;;  %v2338_v50 = vpop.eup %1597  ;;  %1623 = vpow2.f32 %v1032_v17 }
 0x20d   : > { %v1036_v9 = vmul.f32 1.442695, %v2584_v26  ;;  %v2586_v43 = vsub.f32 %v2570_v3, %v2012_v11  ;;  %v1070_v40 = vadd.f32 %v2306_v63, %v1069_v6  ;;  %v1159_v1 = vpack.c.bf16 %v2178_v60, %v2162_v29  ;;  %v2346_v42 = vpop.eup %1599 }
 0x20e   : > { %v1038_v19 = vmul.f32 1.442695, %v2585_v45  ;;  %1625 = vpow2.f32 %v1034_v10  ;;  %v2587_v2 = vsub.f32 %v2572_v12, %v2008_v7  ;;  %v1107_v37 = vadd.f32 %v2314_v14, %v1106_v36  ;;  %1197 = vmatpush1.bf16.msra.mxu1 %v1160_v53  ;;  %v2352_v8 = vpop.eup %1601 }
 0x20f   : > { %v1040_v39 = vmul.f32 1.442695, %v2586_v43  ;;  %1627 = vpow2.f32 %v1036_v9  ;;  %v1044_v11 = vmul.f32 1.442695, %v919_v34  ;;  %v1071_v3 = vadd.f32 %v2322_v47, %v1070_v40  ;;  %1198 = vmatprep.subr.bf16.mxu1 %v1159_v1  ;;  %v2355_v30 = vpop.eup %1603 }
 0x210   : > { %v1042_v62 = vmul.f32 1.442695, %v2587_v2  ;;  %1629 = vpow2.f32 %v1038_v19  ;;  %v1046_v29 = vmul.f32 1.442695, %v920_v55  ;;  %v1108_v60 = vadd.f32 %v2330_v5, %v1107_v37  ;;  %v2360_v12 = vpop.eup %1605 }
 0x211   : > { %v1158_v7 = vpack.c.bf16 %v2170_v27, %v2154_v22  ;;  %1631 = vpow2.f32 %v1040_v39  ;;  %v1048_v32 = vmul.f32 1.442695, %v921_v25  ;;  %v1072_v15 = vadd.f32 %v2338_v50, %v1071_v3  ;;  %v2365_v17 = vpop.eup %1607 }
 0x212   : > { %v1157_v34 = vpack.c.bf16 %v2149_v58, %v2139_v51  ;;  %1633 = vpow2.f32 %v1042_v62  ;;  %v1109_v20 = vadd.f32 %v2346_v42, %v1108_v60  ;;  %v2368_v21 = vpop.eup %1609  ;;  %v1156_v51 = vpack.c.bf16 %v2144_v31, %v2134_v33 }
 0x213   : > { %1199 = vmatpush1.bf16.msra.mxu1 %v1158_v7  ;;  %1635 = vpow2.f32 %v1044_v11  ;;  %v1073_v27 = vadd.f32 %v2352_v8, %v1072_v15  ;;  %v2371_v22 = vpop.eup %1611  ;;  %v1155_v57 = vpack.c.bf16 %v2129_v35, %v2119_v44  ;;  %v1154_v31 = vpack.c.bf16 %v2124_v61, %v2114_v56 }
 0x214   : > { %1200 = vmatprep.subr.bf16.mxu1 %v1157_v34  ;;  %1637 = vpow2.f32 %v1046_v29  ;;  %v1110_v0 = vadd.f32 %v2355_v30, %v1109_v20  ;;  %v2376_v58 = vpop.eup %1613  ;;  %v1153_v35 = vpack.c.bf16 %v2108_v52, %v2096_v48  ;;  %v1152_v61 = vpack.c.bf16 %v2102_v28, %v2090_v46  ;;  %v2589_v46 = vld [vmem:[#allocation10_spill] sm:$0xff]  ;;  %v2590_v28 = vld [vmem:[#allocation8_spill] sm:$0xff] }
 0x215   : > { %1639 = vpow2.f32 %v1048_v32  ;;  %v1074_v55 = vadd.f32 %v2360_v12, %v1073_v27  ;;  %v2381_v10 = vpop.eup %1615  ;;  %v2588_v3 = vpack.c.bf16 %v2084_v23, %v2072_v41  ;;  %v2591_v27 = vpack.c.bf16 %v2589_v46, %v2590_v28  ;;  %v1294_v46 = vld [vmem:[%s362_s16 + $0x8] sm:$0xff] }
 0x216   : > { %v1111_v24 = vadd.f32 %v2365_v17, %v1110_v0  ;;  %v1618_v25 = vpop.eup %1617  ;;  %v1288_v54 = vstv %s1268_s12 }
 0x217   : > { %1201 = vmatpush1.bf16.msra.mxu1 %v1156_v51  ;;  %v1075_v26 = vadd.f32 %v2368_v21, %v1074_v55  ;;  %v1620_v9 = vpop.eup %1619 }
 0x218   : > { %1202 = vmatprep.subr.bf16.mxu1 %v1155_v57  ;;  %v1112_v33 = vadd.f32 %v2371_v22, %v1111_v24  ;;  %v1622_v6 = vpop.eup %1621  ;;  %v2592_v57 = vld [vmem:[#allocation33_spill] sm:$0xff]  ;;  %v2593_v24 = vld [vmem:[#allocation34_spill] sm:$0xff] }
 0x219   : > { %v1076_v45 = vadd.f32 %v2376_v58, %v1075_v26  ;;  %v1624_v44 = vpop.eup %1623  ;;  %v1176_v36 = vpack.c.bf16 %v1622_v6, %v1618_v25 }
 0x21a   : > { %v1113_v19 = vadd.f32 %v2381_v10, %v1112_v33  ;;  %v1177_v39 = vpack.c.bf16 %v1624_v44, %v1620_v9 }
 0x21b   : > { %1203 = vmatpush1.bf16.msra.mxu1 %v1154_v31  ;;  %v1626_v53 = vpop.eup %1625  ;;  %v1077_v43 = vadd.f32 %v1618_v25, %v1076_v45  ;;  %v2594_v25 = vsub.f32 %v2592_v57, %v2593_v24  ;;  %v1295_v57 = vld [vmem:[%s362_s16 + $0x10] sm:$0xff] }
 0x21c   : > { %1204 = vmatprep.subr.bf16.mxu1 %v1153_v35  ;;  %v1628_v40 = vpop.eup %1627  ;;  %v1114_v1 = vadd.f32 %v1620_v9, %v1113_v19 }
 0x21d   : > { %v1630_v56 = vpop.eup %1629  ;;  %v1078_v2 = vadd.f32 %v1622_v6, %v1077_v43  ;;  %v845_v26 = vmul.f32 1.442695, %v2594_v25 }
 0x21e   : > { %v1632_v62 = vpop.eup %1631  ;;  %v1115_v37 = vadd.f32 %v1624_v44, %v1114_v1  ;;  %v1178_v48 = vpack.c.bf16 %v1630_v56, %v1626_v53 }
 0x21f   : > { %1205 = vmatpush1.bf16.msra.mxu1 %v1152_v61  ;;  %v1634_v52 = vpop.eup %1633  ;;  %v1079_v11 = vadd.f32 %v1626_v53, %v1078_v2  ;;  %v1179_v29 = vpack.c.bf16 %v1632_v62, %v1628_v40  ;;  %1641 = vpow2.f32 %v845_v26  ;;  %v1175_v53 = vpack.c.bf16 %v2381_v10, %v2371_v22  ;;  %v1050_v10 = vld [vmem:[#allocation3] sm:$0x3] }
 0x220   : > { %1206 = vmatprep.subr.bf16.mxu1 %v2588_v3  ;;  %v1636_v60 = vpop.eup %1635  ;;  %v1116_v7 = vadd.f32 %v1628_v40, %v1115_v37  ;;  %v1174_v61 = vpack.c.bf16 %v2376_v58, %v2368_v21  ;;  %v1173_v2 = vpack.c.bf16 %v2365_v17, %v2355_v30  ;;  %v1172_v37 = vpack.c.bf16 %v2360_v12, %v2352_v8 }
 0x221   : > { %v1638_v32 = vpop.eup %1637  ;;  %v1080_v15 = vadd.f32 %v1630_v56, %v1079_v11  ;;  %v1170_v17 = vpack.c.bf16 %v2338_v50, %v2322_v47  ;;  %v1169_v58 = vpack.c.bf16 %v2314_v14, %v2298_v4  ;;  %v2597_v14 = vld [vmem:[#allocation35_spill] sm:$0xff]  ;;  %v2598_v50 = vld [vmem:[#allocation36_spill] sm:$0xff] }
 0x222   : > { %v1640_v34 = vpop.eup %1639  ;;  %v1117_v20 = vadd.f32 %v1632_v62, %v1116_v7  ;;  %v1180_v0 = vpack.c.bf16 %v1638_v32, %v1634_v52  ;;  %v1293_v7 = vld [vmem:[%s362_s16] sm:$0xff] }
 0x223   : > { %1207 = vmatpush1.bf16.msra.mxu1 %v2591_v27  ;;  %v1081_v51 = vadd.f32 %v1634_v52, %v1080_v15  ;;  %v1181_v55 = vpack.c.bf16 %v1640_v34, %v1636_v60 }
 0x224   : > { %v1118_v41 = vadd.f32 %v1636_v60, %v1117_v20 }
 0x225   : > { %v1082_v23 = vadd.f32 %v1638_v32, %v1081_v51  ;;  %1208 = vmatprep.subr.bf16.mxu1 %v1181_v55 }
 0x226   : > { %v1119_v9 = vadd.f32 %v1640_v34, %v1118_v41  ;;  %v1296_v41 = vld [vmem:[%s362_s16 + $0x18] sm:$0xff] }
 0x227   : > { %1209 = vmatpush2.bf16.msra.mxu1 %v1180_v0  ;;  %v1083_v33 = vrot.slane %v1082_v23, 4 }
 0x228   : > { %1210 = vmatprep.subr.bf16.mxu1 %v1179_v29  ;;  %v1120_v31 = vrot.slane %v1119_v9, 4 }
 0x229   : > { %v1084_v6 = vadd.f32 %v1083_v33, %v1082_v23 }
 0x22a   : > { %v1121_v45 = vadd.f32 %v1120_v31, %v1119_v9 }
 0x22b   : > { %1211 = vmatpush2.bf16.msra.mxu1 %v1178_v48  ;;  %v1085_v35 = vrot.slane %v1084_v6, 2  ;;  %v2595_v48 = vld [vmem:[#allocation7_spill] sm:$0xff] }
 0x22c   : > { %1212 = vmatprep.subr.bf16.mxu1 %v1177_v39  ;;  %v1122_v44 = vrot.slane %v1121_v45, 2  ;;  %v1642_v22 = vpop.eup %1641 }
 0x22d   : > { %v1086_v19 = vadd.f32 %v1085_v35, %v1084_v6  ;;  %v1051_v21 = vmul.f32 %v1642_v22, %v1050_v10  ;;  %v1243_v47 = vrot.slane %v1642_v22, %v2597_v14  ;;  %v1247_v11 = vrot.slane %v1642_v22, %v2598_v50 }
 0x22e   : > { %v1123_v43 = vadd.f32 %v1122_v44, %v1121_v45 }
 0x22f   : > { %1213 = vmatpush2.bf16.msra.mxu1 %v1176_v36  ;;  %v1087_v40 = vrot.slane %v1086_v19, 1  ;;  %v1171_v36 = vpack.c.bf16 %v2346_v42, %v2330_v5  ;;  %v1168_v5 = vpack.c.bf16 %v2306_v63, %v2290_v16  ;;  %v1510_v42 = vld [vmem:[%s1997_s11] ss:$8 sps:$4 sm:$0xff]   ;;  %v1250_v16 = vmul.f32 0.0, %v1243_v47 }
 0x230   : > { %1214 = vmatprep.subr.bf16.mxu1 %v1175_v53  ;;  %v1124_v1 = vrot.slane %v1123_v43, 1  ;;  %v1251_v59 = vmul.f32 0.0, %v1247_v11 }
 0x231   : > { %v1088_v56 = vadd.f32 %v1087_v40, %v1086_v19 }
 0x232   : > { %v1125_v62 = vadd.f32 %v1124_v1, %v1123_v43 }
 0x233   : > { %1215 = vmatpush2.bf16.msra.mxu1 %v1174_v61 }
 0x234   : > { %1216 = vmatprep.subr.bf16.mxu1 %v1173_v2  ;;  %v1128_v39 = vcombine.low %v1088_v56, %v1125_v62 }
 0x236   : > { %v1135_v52 = vrot.slane %v1128_v39, %v2595_v48 }
 0x237   : > { %1217 = vmatpush2.bf16.msra.mxu1 %v1172_v37 }
 0x238   : > { %1218 = vmatprep.subr.bf16.mxu1 %v1171_v36  ;;  %v1142_v30 = vrot.slane %v1135_v52, %v2595_v48 }
 0x23a   : > { %v1144_v8 = vadd.f32 %v1142_v30, %v1051_v21 }
 0x23b   : > { %1219 = vmatpush2.bf16.msra.mxu1 %v1170_v17 }
 0x23c   : > { %1220 = vmatprep.subr.bf16.mxu1 %v1169_v58  ;;  %1149 = vst.msk [vmem:[#allocation3] sm:$0x3] %vm1793_vm2, %v1144_v8 }
 0x23f   : > { %1221 = vmatpush2.bf16.msra.mxu1 %v1168_v5 }
 0x240   : > { %1222 = vmatprep.subr.bf16.mxu1 %v1167_v38 }
 0x243   : > { %1223 = vmatpush2.bf16.msra.mxu1 %v1166_v49  ;;  %v1266_v4 = vld [vmem:[#allocation3] sm:$0x3] }
 0x244   : > { %1643 = vrcp.f32 %v1266_v4 }
 0x246   : > { %1225 = vmatmul.mubr.bf16.vlgmr.msra.gmra.mxu1 %v1510_v42 }
 0x251   : > { %v1644_v3 = vpop.eup %1643 }
 0x252   : > { %v1277_v13 = vrot.slane %v1644_v3, %v2597_v14  ;;  %v1281_v60 = vrot.slane %v1644_v3, %v2598_v50 }
 0x306   : > { %v1226_v63 = vpop.f32.mrf.mxu1 }
 0x307   : > { %v1254_v18 = vadd.f32 %v1250_v16, %v1226_v63 }
 0x308   : > { %v1228_v49 = vpop.f32.mrf.mxu1 }
 0x309   : > { %v1284_v38 = vmul.f32 %v1277_v13, %v1254_v18  ;;  %v1255_v29 = vadd.f32 %v1251_v59, %v1228_v49 }
 0x30a   : > { %v1230_v32 = vpop.f32.mrf.mxu1 }
 0x30b   : > { %v1289_v15 = vmul.f32 %v1288_v54, %v1284_v38  ;;  %v1285_v34 = vmul.f32 %v1281_v60, %v1255_v29  ;;  %v1256_v20 = vadd.f32 %v1250_v16, %v1230_v32 }
 0x30c   : > { %v1232_v28 = vpop.f32.mrf.mxu1 }
 0x30d   : > { %v1297_v27 = vadd.f32 %v1293_v7, %v1289_v15  ;;  %v1290_v0 = vmul.f32 %v1288_v54, %v1285_v34  ;;  %v1286_v51 = vmul.f32 %v1277_v13, %v1256_v20  ;;  %v1257_v55 = vadd.f32 %v1251_v59, %v1232_v28 }
 0x30f   : > { %1301 = vst [vmem:[%s400_s19] sm:$0xff] %v1297_v27  ;;  %v1298_v24 = vadd.f32 %v1294_v46, %v1290_v0  ;;  %v1291_v25 = vmul.f32 %v1288_v54, %v1286_v51  ;;  %v1287_v26 = vmul.f32 %v1281_v60, %v1257_v55 }
 0x311   : > { %1302 = vst [vmem:[%s400_s19 + $0x8] sm:$0xff] %v1298_v24  ;;  %v1299_v23 = vadd.f32 %v1295_v57, %v1291_v25  ;;  %v1292_v9 = vmul.f32 %v1288_v54, %v1287_v26 }
 0x313   : > { %1303 = vst [vmem:[%s400_s19 + $0x10] sm:$0xff] %v1299_v23  ;;  %v1300_v33 = vadd.f32 %v1296_v41, %v1292_v9 }
 0x315   : > { %1304 = vst [vmem:[%s400_s19 + $0x18] sm:$0xff] %v1300_v33 }
 0x316 PF: > { %s18_s25 = sadd.s32 1, %s1667_s25   ;;  %s2599_s23 = smov %s1663_s24 }
 0x317   : > { %p15_p5 = scmp.ge.s32.totalorder %s18_s25, 4   ;;  %s2600_s24 = smov %s2602_s4 }
 0x319   :  { %17 = sbr.rel (!%p15_p5) target bundleno = 2 (0x2), region = 91 }

</bundles_post_ra>
